<compile_context>
chip_gen: v7x
topology: tpu7x:2x2x1
jax: 0.10.0
libtpu: 0.0.40
codegen_flags: <defaults>
</compile_context>

<pallas_src>
import jax
import jax.numpy as jnp
from jax.experimental import pallas as pl
from jax.experimental.pallas import tpu as pltpu


def _round_up(n, m):
    return ((n + m - 1) // m) * m


def _cdiv(a, b):
    return -(-a // b)


def _default_vmem_limit():
    """Per-generation VMEM budget with headroom; safe fallback if query fails."""
    try:
        cap = pltpu.get_tpu_info().vmem_capacity_bytes
    except Exception:
        cap = 64 * 1024 * 1024  # assume the smallest (v7x per-TC)
    return min(int(cap * 3 // 4), 100 * 1024 * 1024)


def qnet_kernel(x_ref,
                w1_ref, b1_ref,
                w2_ref, b2_ref,
                w3_ref, b3_ref,
                w4_ref, b4_ref,
                w5_ref, b5_ref,
                out_ref):
    """One batch block through all 5 layers (weights resident across grid steps)."""
    x = x_ref[...]
    stream_dtype = x.dtype

    def dense(h, w_ref, b_ref):
        # f32 accumulation on the MXU regardless of streaming dtype; bias/ReLU in f32.
        return jnp.dot(h, w_ref[...], preferred_element_type=jnp.float32) + b_ref[...]

    h = jnp.maximum(dense(x, w1_ref, b1_ref), 0.0).astype(stream_dtype)  # linear1+relu
    h = jnp.maximum(dense(h, w2_ref, b2_ref), 0.0).astype(stream_dtype)  # linear2+relu
    h = jnp.maximum(dense(h, w3_ref, b3_ref), 0.0).astype(stream_dtype)  # linear3+relu
    h = jnp.maximum(dense(h, w4_ref, b4_ref), 0.0).astype(stream_dtype)  # linear4+relu
    q = dense(h, w5_ref, b5_ref)                                         # qvalues
    out_ref[...] = q.astype(out_ref.dtype)


def prepare_params(params, dtype=jnp.float32):
    """Pad weights/biases to lane-dense shapes ONCE (hoisted out of the forward call).

    params: list of (W, b), W: [in, out] (transposed vs PyTorch), b: [1, out].
    dtype:  streaming dtype for x/weights/activations (jnp.bfloat16 recommended on
            v6e/v7x; keep jnp.float32 on v5e unless bandwidth-bound). Accumulation
            and biases stay f32 either way.
    """
    feat_dims = [params[0][0].shape[0]] + [w.shape[1] for w, _ in params]
    # Input feature dim stays at its true width (x streams unpadded); all downstream
    # feature dims are padded to multiples of 128 so matmuls/outputs are lane-dense.
    pad_dims = [feat_dims[0]] + [_round_up(d, 128) for d in feat_dims[1:]]

    flat = []
    for li, (w, b) in enumerate(params):
        pin, pout = pad_dims[li], pad_dims[li + 1]
        wp = jnp.zeros((pin, pout), dtype).at[:w.shape[0], :w.shape[1]].set(
            w.astype(dtype))
        bp = jnp.zeros((1, pout), jnp.float32).at[:, :b.shape[1]].set(
            b.astype(jnp.float32))
        flat.extend([wp, bp])

    return {
        "flat": tuple(flat),
        "pad_dims": tuple(pad_dims),
        "n_actions": params[-1][0].shape[1],
        "dtype": dtype,
    }


def qnet_forward(x, prepared, *, block_batch=2048, vmem_limit_bytes=None,
                 out_dtype=jnp.float32):
    """Fused 5-layer MLP forward. `prepared` comes from prepare_params()."""
    batch, input_dim = x.shape
    pad_dims = prepared["pad_dims"]
    n_actions = prepared["n_actions"]
    stream_dtype = prepared["dtype"]
    flat = prepared["flat"]
    n_layers = len(flat) // 2
    assert input_dim == pad_dims[0], "x feature dim must match linear1 fan_in"

    if vmem_limit_bytes is None:
        vmem_limit_bytes = _default_vmem_limit()

    # Batch tiling: multiple of 8 (f32 sublane). Keep the grid even (>=2 blocks when
    # batch allows) so v7x's two TensorCores split the "parallel" axis evenly.
    tb = _round_up(min(block_batch, max(batch, 1)), 8)
    num_blocks = _cdiv(batch, tb)
    if batch >= 16 and num_blocks < 2:
        num_blocks = 2
    if num_blocks > 1 and num_blocks % 2:
        num_blocks += 1
    tb = _round_up(_cdiv(batch, num_blocks), 8)
    padded_batch = num_blocks * tb

    # Row-pad x only when needed; never materialize a feature-padded copy.
    xin = x.astype(stream_dtype)
    if padded_batch != batch:
        xin = jnp.pad(xin, ((0, padded_batch - batch), (0, 0)))

    in_specs = [pl.BlockSpec((tb, input_dim), lambda i: (i, 0))]
    for li in range(n_layers):
        pin, pout = pad_dims[li], pad_dims[li + 1]
        # Constant index_map: weights/biases DMA'd once, resident across grid steps.
        in_specs.append(pl.BlockSpec((pin, pout), lambda i: (0, 0)))
        in_specs.append(pl.BlockSpec((1, pout), lambda i: (0, 0)))

    out_spec = pl.BlockSpec((tb, pad_dims[-1]), lambda i: (i, 0))

    # Advisory cost estimate so XLA schedules surrounding ops around the kernel.
    flops = 2 * padded_batch * sum(pad_dims[i] * pad_dims[i + 1]
                                   for i in range(n_layers))
    bytes_accessed = (xin.size * xin.dtype.itemsize
                      + sum(int(a.size) * a.dtype.itemsize for a in flat)
                      + padded_batch * pad_dims[-1] * jnp.dtype(out_dtype).itemsize)

    out = pl.pallas_call(
        qnet_kernel,
        out_shape=jax.ShapeDtypeStruct((padded_batch, pad_dims[-1]), out_dtype),
        grid=(num_blocks,),
        in_specs=in_specs,
        out_specs=out_spec,
        compiler_params=pltpu.CompilerParams(
            dimension_semantics=("parallel",),   # shard batch blocks across TCs (v7x)
            vmem_limit_bytes=vmem_limit_bytes,
        ),
        cost_estimate=pl.CostEstimate(flops=flops, transcendentals=0,
                                      bytes_accessed=bytes_accessed),
    )(xin, *flat)

    # Strip batch/lane padding. (Padded rows/lanes are never read by callers.)
    return out[:batch, :n_actions]


def init_params(key, input_dim, n_actions, hidden_dim=128):
    """Deterministic init mirroring nn.Linear default: U(-1/sqrt(fan_in), 1/sqrt(fan_in)).

    Matches the module: linear1(in,h), linear2(h,h), linear3(h,h),
    linear4(h,n_actions), qvalues(n_actions,n_actions)."""
    dims = [(input_dim, hidden_dim),
            (hidden_dim, hidden_dim),
            (hidden_dim, hidden_dim),
            (hidden_dim, n_actions),
            (n_actions, n_actions)]
    params = []
    for (fan_in, fan_out) in dims:
        key, kw, kb = jax.random.split(key, 3)
        bound = 1.0 / (fan_in ** 0.5)
        w = jax.random.uniform(kw, (fan_in, fan_out), jnp.float32, -bound, bound)
        b = jax.random.uniform(kb, (1, fan_out), jnp.float32, -bound, bound)
        params.append((w, b))
    return params


def qnet_reference(x, params):
    """Plain-JAX reference for correctness checking."""
    h = x
    for i, (w, b) in enumerate(params):
        h = h @ w + b
        if i < len(params) - 1:
            h = jnp.maximum(h, 0.0)
    return h


if __name__ == "__main__":
    key = jax.random.PRNGKey(0)
    key, kx = jax.random.split(key)

    # Small shapes consistent with the module's forward. batch=24 with block_batch=8
    # exercises a multi-step (even) batch grid plus batch-row and lane padding.
    batch, input_dim, hidden_dim, n_actions = 24, 16, 32, 8

    x = jax.random.normal(kx, (batch, input_dim), jnp.float32)
    params = init_params(key, input_dim, n_actions, hidden_dim)
    ref = qnet_reference(x, params)

    # f32 path: exact (padding preserved zeros; f32 MXU accumulation).
    prepared_f32 = prepare_params(params, dtype=jnp.float32)
    out = qnet_forward(x, prepared_f32, block_batch=8)
    out = jax.block_until_ready(out)
    assert out.shape == (batch, n_actions)
    assert jnp.allclose(out, ref, atol=1e-5, rtol=1e-5)

    # bf16 streaming path (recommended default on v6e/v7x): looser tolerance since
    # x/weights/activations are quantized to bf16 (accumulation stays f32).
    prepared_bf16 = prepare_params(params, dtype=jnp.bfloat16)
    out_bf16 = qnet_forward(x, prepared_bf16)   # default block_batch=2048 path
    out_bf16 = jax.block_until_ready(out_bf16)
    assert out_bf16.shape == (batch, n_actions)
    assert bool(jnp.all(jnp.isfinite(out_bf16)))
    assert jnp.allclose(out_bf16, ref, atol=1e-1, rtol=1e-1)

    print("KERNEL_OK")
</pallas_src>

<mosaic_0001>
module attributes {stable_mosaic.version = 11 : i64} {
  func.func @qnet_kernel(%arg0: i32, %arg1: memref<8x16xf32, #tpu.memory_space<vmem>>, %arg2: memref<16x128xf32, #tpu.memory_space<vmem>>, %arg3: memref<1x128xf32, #tpu.memory_space<vmem>>, %arg4: memref<128x128xf32, #tpu.memory_space<vmem>>, %arg5: memref<1x128xf32, #tpu.memory_space<vmem>>, %arg6: memref<128x128xf32, #tpu.memory_space<vmem>>, %arg7: memref<1x128xf32, #tpu.memory_space<vmem>>, %arg8: memref<128x128xf32, #tpu.memory_space<vmem>>, %arg9: memref<1x128xf32, #tpu.memory_space<vmem>>, %arg10: memref<128x128xf32, #tpu.memory_space<vmem>>, %arg11: memref<1x128xf32, #tpu.memory_space<vmem>>, %arg12: memref<8x128xf32, #tpu.memory_space<vmem>>) attributes {dimension_semantics = [#tpu.dimension_semantics<parallel>], iteration_bounds = array<i64: 4>, scalar_prefetch = 0 : i64, scratch_operands = 0 : i64, tpu.core_type = #tpu.core_type<tc>, window_params = [{transform_indices = @transform_0, window_bounds = array<i64: 8, 16>}, {pipeline_mode = #tpu.pipeline_mode<synchronous>, transform_indices = @transform_1, window_bounds = array<i64: 16, 128>}, {pipeline_mode = #tpu.pipeline_mode<synchronous>, transform_indices = @transform_2, window_bounds = array<i64: 1, 128>}, {pipeline_mode = #tpu.pipeline_mode<synchronous>, transform_indices = @transform_3, window_bounds = array<i64: 128, 128>}, {pipeline_mode = #tpu.pipeline_mode<synchronous>, transform_indices = @transform_4, window_bounds = array<i64: 1, 128>}, {pipeline_mode = #tpu.pipeline_mode<synchronous>, transform_indices = @transform_5, window_bounds = array<i64: 128, 128>}, {pipeline_mode = #tpu.pipeline_mode<synchronous>, transform_indices = @transform_6, window_bounds = array<i64: 1, 128>}, {pipeline_mode = #tpu.pipeline_mode<synchronous>, transform_indices = @transform_7, window_bounds = array<i64: 128, 128>}, {pipeline_mode = #tpu.pipeline_mode<synchronous>, transform_indices = @transform_8, window_bounds = array<i64: 1, 128>}, {pipeline_mode = #tpu.pipeline_mode<synchronous>, transform_indices = @transform_9, window_bounds = array<i64: 128, 128>}, {pipeline_mode = #tpu.pipeline_mode<synchronous>, transform_indices = @transform_10, window_bounds = array<i64: 1, 128>}, {transform_indices = @transform_11, window_bounds = array<i64: 8, 128>}]} {
    %c0 = arith.constant 0 : index
    %c0_0 = arith.constant 0 : index
    %0 = vector.load %arg1[%c0, %c0_0] : memref<8x16xf32, #tpu.memory_space<vmem>>, vector<8x16xf32>
    %c0_1 = arith.constant 0 : index
    %c0_2 = arith.constant 0 : index
    %1 = vector.load %arg2[%c0_1, %c0_2] : memref<16x128xf32, #tpu.memory_space<vmem>>, vector<16x128xf32>
    %cst = arith.constant dense<0.000000e+00> : vector<8x128xf32>
    %2 = tpu.matmul %0, %1, %cst {dimension_numbers = #tpu.dot_dimension_numbers<[1], [0], [0], [1], [0, 0, 1, 1], [], []>} : vector<8x16xf32>, vector<16x128xf32>, vector<8x128xf32> -> vector<8x128xf32>
    %c0_3 = arith.constant 0 : index
    %c0_4 = arith.constant 0 : index
    %3 = vector.load %arg3[%c0_3, %c0_4] : memref<1x128xf32, #tpu.memory_space<vmem>>, vector<1x128xf32>
    %4 = vector.broadcast %3 : vector<1x128xf32> to vector<8x128xf32>
    %5 = arith.addf %2, %4 : vector<8x128xf32>
    %cst_5 = arith.constant 0.000000e+00 : f32
    %6 = vector.broadcast %cst_5 : f32 to vector<8x128xf32>
    %7 = arith.maximumf %5, %6 : vector<8x128xf32>
    %c0_6 = arith.constant 0 : index
    %c0_7 = arith.constant 0 : index
    %8 = vector.load %arg4[%c0_6, %c0_7] : memref<128x128xf32, #tpu.memory_space<vmem>>, vector<128x128xf32>
    %cst_8 = arith.constant dense<0.000000e+00> : vector<8x128xf32>
    %9 = tpu.matmul %7, %8, %cst_8 {dimension_numbers = #tpu.dot_dimension_numbers<[1], [0], [0], [1], [0, 0, 1, 1], [], []>} : vector<8x128xf32>, vector<128x128xf32>, vector<8x128xf32> -> vector<8x128xf32>
    %c0_9 = arith.constant 0 : index
    %c0_10 = arith.constant 0 : index
    %10 = vector.load %arg5[%c0_9, %c0_10] : memref<1x128xf32, #tpu.memory_space<vmem>>, vector<1x128xf32>
    %11 = vector.broadcast %10 : vector<1x128xf32> to vector<8x128xf32>
    %12 = arith.addf %9, %11 : vector<8x128xf32>
    %cst_11 = arith.constant 0.000000e+00 : f32
    %13 = vector.broadcast %cst_11 : f32 to vector<8x128xf32>
    %14 = arith.maximumf %12, %13 : vector<8x128xf32>
    %c0_12 = arith.constant 0 : index
    %c0_13 = arith.constant 0 : index
    %15 = vector.load %arg6[%c0_12, %c0_13] : memref<128x128xf32, #tpu.memory_space<vmem>>, vector<128x128xf32>
    %cst_14 = arith.constant dense<0.000000e+00> : vector<8x128xf32>
    %16 = tpu.matmul %14, %15, %cst_14 {dimension_numbers = #tpu.dot_dimension_numbers<[1], [0], [0], [1], [0, 0, 1, 1], [], []>} : vector<8x128xf32>, vector<128x128xf32>, vector<8x128xf32> -> vector<8x128xf32>
    %c0_15 = arith.constant 0 : index
    %c0_16 = arith.constant 0 : index
    %17 = vector.load %arg7[%c0_15, %c0_16] : memref<1x128xf32, #tpu.memory_space<vmem>>, vector<1x128xf32>
    %18 = vector.broadcast %17 : vector<1x128xf32> to vector<8x128xf32>
    %19 = arith.addf %16, %18 : vector<8x128xf32>
    %cst_17 = arith.constant 0.000000e+00 : f32
    %20 = vector.broadcast %cst_17 : f32 to vector<8x128xf32>
    %21 = arith.maximumf %19, %20 : vector<8x128xf32>
    %c0_18 = arith.constant 0 : index
    %c0_19 = arith.constant 0 : index
    %22 = vector.load %arg8[%c0_18, %c0_19] : memref<128x128xf32, #tpu.memory_space<vmem>>, vector<128x128xf32>
    %cst_20 = arith.constant dense<0.000000e+00> : vector<8x128xf32>
    %23 = tpu.matmul %21, %22, %cst_20 {dimension_numbers = #tpu.dot_dimension_numbers<[1], [0], [0], [1], [0, 0, 1, 1], [], []>} : vector<8x128xf32>, vector<128x128xf32>, vector<8x128xf32> -> vector<8x128xf32>
    %c0_21 = arith.constant 0 : index
    %c0_22 = arith.constant 0 : index
    %24 = vector.load %arg9[%c0_21, %c0_22] : memref<1x128xf32, #tpu.memory_space<vmem>>, vector<1x128xf32>
    %25 = vector.broadcast %24 : vector<1x128xf32> to vector<8x128xf32>
    %26 = arith.addf %23, %25 : vector<8x128xf32>
    %cst_23 = arith.constant 0.000000e+00 : f32
    %27 = vector.broadcast %cst_23 : f32 to vector<8x128xf32>
    %28 = arith.maximumf %26, %27 : vector<8x128xf32>
    %c0_24 = arith.constant 0 : index
    %c0_25 = arith.constant 0 : index
    %29 = vector.load %arg10[%c0_24, %c0_25] : memref<128x128xf32, #tpu.memory_space<vmem>>, vector<128x128xf32>
    %cst_26 = arith.constant dense<0.000000e+00> : vector<8x128xf32>
    %30 = tpu.matmul %28, %29, %cst_26 {dimension_numbers = #tpu.dot_dimension_numbers<[1], [0], [0], [1], [0, 0, 1, 1], [], []>} : vector<8x128xf32>, vector<128x128xf32>, vector<8x128xf32> -> vector<8x128xf32>
    %c0_27 = arith.constant 0 : index
    %c0_28 = arith.constant 0 : index
    %31 = vector.load %arg11[%c0_27, %c0_28] : memref<1x128xf32, #tpu.memory_space<vmem>>, vector<1x128xf32>
    %32 = vector.broadcast %31 : vector<1x128xf32> to vector<8x128xf32>
    %33 = arith.addf %30, %32 : vector<8x128xf32>
    %c0_29 = arith.constant 0 : index
    %c0_30 = arith.constant 0 : index
    %34 = vector.load %arg12[%c0_29, %c0_30] : memref<8x128xf32, #tpu.memory_space<vmem>>, vector<8x128xf32>
    tpu.vector_store %arg12[%c0_29, %c0_30], %33 {strides = array<i32>} : memref<8x128xf32, #tpu.memory_space<vmem>>, vector<8x128xf32>,
    return
  }
  func.func @transform_0(%arg0: i32) -> (i32, i32) {
    %c0_i32 = arith.constant 0 : i32
    %c0_i32_0 = arith.constant 0 : i32
    return %arg0, %c0_i32 : i32, i32
  }
  func.func @transform_1(%arg0: i32) -> (i32, i32) {
    %c0_i32 = arith.constant 0 : i32
    %c0_i32_0 = arith.constant 0 : i32
    %c0_i32_1 = arith.constant 0 : i32
    return %c0_i32, %c0_i32_0 : i32, i32
  }
  func.func @transform_2(%arg0: i32) -> (i32, i32) {
    %c0_i32 = arith.constant 0 : i32
    %c0_i32_0 = arith.constant 0 : i32
    %c0_i32_1 = arith.constant 0 : i32
    return %c0_i32, %c0_i32_0 : i32, i32
  }
  func.func @transform_3(%arg0: i32) -> (i32, i32) {
    %c0_i32 = arith.constant 0 : i32
    %c0_i32_0 = arith.constant 0 : i32
    %c0_i32_1 = arith.constant 0 : i32
    return %c0_i32, %c0_i32_0 : i32, i32
  }
  func.func @transform_4(%arg0: i32) -> (i32, i32) {
    %c0_i32 = arith.constant 0 : i32
    %c0_i32_0 = arith.constant 0 : i32
    %c0_i32_1 = arith.constant 0 : i32
    return %c0_i32, %c0_i32_0 : i32, i32
  }
  func.func @transform_5(%arg0: i32) -> (i32, i32) {
    %c0_i32 = arith.constant 0 : i32
    %c0_i32_0 = arith.constant 0 : i32
    %c0_i32_1 = arith.constant 0 : i32
    return %c0_i32, %c0_i32_0 : i32, i32
  }
  func.func @transform_6(%arg0: i32) -> (i32, i32) {
    %c0_i32 = arith.constant 0 : i32
    %c0_i32_0 = arith.constant 0 : i32
    %c0_i32_1 = arith.constant 0 : i32
    return %c0_i32, %c0_i32_0 : i32, i32
  }
  func.func @transform_7(%arg0: i32) -> (i32, i32) {
    %c0_i32 = arith.constant 0 : i32
    %c0_i32_0 = arith.constant 0 : i32
    %c0_i32_1 = arith.constant 0 : i32
    return %c0_i32, %c0_i32_0 : i32, i32
  }
  func.func @transform_8(%arg0: i32) -> (i32, i32) {
    %c0_i32 = arith.constant 0 : i32
    %c0_i32_0 = arith.constant 0 : i32
    %c0_i32_1 = arith.constant 0 : i32
    return %c0_i32, %c0_i32_0 : i32, i32
  }
  func.func @transform_9(%arg0: i32) -> (i32, i32) {
    %c0_i32 = arith.constant 0 : i32
    %c0_i32_0 = arith.constant 0 : i32
    %c0_i32_1 = arith.constant 0 : i32
    return %c0_i32, %c0_i32_0 : i32, i32
  }
  func.func @transform_10(%arg0: i32) -> (i32, i32) {
    %c0_i32 = arith.constant 0 : i32
    %c0_i32_0 = arith.constant 0 : i32
    %c0_i32_1 = arith.constant 0 : i32
    return %c0_i32, %c0_i32_0 : i32, i32
  }
  func.func @transform_11(%arg0: i32) -> (i32, i32) {
    %c0_i32 = arith.constant 0 : i32
    %c0_i32_0 = arith.constant 0 : i32
    return %arg0, %c0_i32 : i32, i32
  }
}

</mosaic_0001>

<bundles_post_ra>
// kernel: tpu_custom_call.1
= control target key start
LH: loop header
LB: loop body
LE: loop exit
PB: predicated region body
PF: predicated region fallthrough
CT: control target
= control target key end

     0   :  { %s1998_s0 = inlined_call_operand.vmem [shape: f32[32,16], index: 0, kind: input, shape index: {}]   ;;  %s1999_s1 = inlined_call_operand.vmem [shape: f32[16,128], index: 1, kind: input, shape index: {}]   ;;  %s2000_s2 = inlined_call_operand.vmem [shape: f32[1,128], index: 2, kind: input, shape index: {}]   ;;  %s2001_s3 = inlined_call_operand.hbm [shape: f32[128,128], index: 3, kind: input, shape index: {}]   ;;  %s2002_s4 = inlined_call_operand.vmem [shape: f32[1,128], index: 4, kind: input, shape index: {}]   ;;  %s2003_s5 = inlined_call_operand.hbm [shape: f32[128,128], index: 5, kind: input, shape index: {}]   ;;  %s2004_s6 = inlined_call_operand.vmem [shape: f32[1,128], index: 6, kind: input, shape index: {}]   ;;  %s2005_s7 = inlined_call_operand.hbm [shape: f32[128,128], index: 7, kind: input, shape index: {}]   ;;  %s2006_s8 = inlined_call_operand.vmem [shape: f32[1,128], index: 8, kind: input, shape index: {}]   ;;  %s2007_s9 = inlined_call_operand.hbm [shape: f32[128,128], index: 9, kind: input, shape index: {}]   ;;  %s2008_s10 = inlined_call_operand.vmem [shape: f32[1,128], index: 10, kind: input, shape index: {}]   ;;  %s2009_s11 = inlined_call_operand.hbm [shape: f32[32,128], index: 11, kind: output, shape index: {}]  }
   0x1   :  { %2020 = sst [smem:[#allocation21_spill]] %s2009_s11 }
   0x2   :  { %16 = vsyncpa [#allocation3], 0 }
   0x3   :  { %17 = vsyncpa [#allocation6], 0 }
   0x4   :  { %18 = vsyncpa [#allocation9], 0 }
   0x5   :  { %19 = vsyncpa [#allocation4], 0 }
   0x6   :  { %21 = vsyncpa [#allocation4 + $0x1], 0  ;;  %s1700_s17 = smov 0   ;;  %s1702_s18 = smov 0  }
   0x7   :  { %s1704_s19 = smov 0   ;;  %s1706_s20 = smov 0  }
   0x8 LB: > { %2021 = sst [smem:[#allocation15_spill]] %s1616_s17  ;;  %s1721_s21 = sadd.s32 4294967295, %s1628_s20   ;;  %s1628_s20 = sphi %s1706_s20, %s2045_s20   ;;  %s1624_s19 = sphi %s1704_s19, %s2047_s19   ;;  %s1620_s18 = sphi %s1702_s18, %s2049_s18   ;;  %s1616_s17 = sphi %s1700_s17, %s2048_s17  }
   0x9   : > { %2022 = sst [smem:[#allocation16_spill]] %s1624_s19  ;;  %s1016_s22 = sadd.s32 4294967294, %s1628_s20  }
   0xa   : > { %2023 = sst [smem:[#allocation17_spill]] %s1628_s20  ;;  %s1725_s23 = sadd.s32 1, %s1628_s20  }
   0xb   : > { %2024 = sst [smem:[#allocation18_spill]] %s1725_s23  ;;  %s270_s24 = sadd.s32 1, %s1624_s19 }
   0xc   : > { %s267_s25 = ssub.s32 %s1628_s20, %s1725_s23  ;;  %p280_p0 = scmp.ne.s32.totalorder %s1624_s19, %s1620_s18 }
   0xd   : > { %p268_p1 = scmp.eq.s32.totalorder %s267_s25, 0  ;;  %p281_p2 = scmp.eq.s32.totalorder %s1721_s21, 3 }
   0xe   : > { %p286_p3 = scmp.ne.s32.totalorder %s1620_s18, %s1616_s17  ;;  %p287_p4 = scmp.eq.s32.totalorder %s1016_s22, 3 }
   0xf   : > { %s1736_s26 = scalar_select %p268_p1, %s1624_s19, %s270_s24  }
  0x10   : > { %p1738_p5 = por %p281_p2, %p280_p0  ;;  %p1742_p6 = por %p287_p4, %p286_p3 }
  0x11   : > { %2025 = sst [smem:[#allocation19_spill]] %s1736_s26  ;;  %p1017_p7 = scmp.ge.s32.totalorder %s1628_s20, 1 }
  0x12   : > { %s2026_s27 = scalar_select %p1738_p5, 1, 0 }
  0x13   : > { %s2027_s28 = scalar_select %p1742_p6, 1, 0 }
  0x14   : > { %p294_p8 = scmp.lt.s32.totalorder %s1628_s20, 5  ;;  %p2013_p9 = scmp.eq.s32.totalorder %s1721_s21, 0 }
  0x15   : > { %2028 = sst [smem:[#allocation20_spill]] %s2027_s28  ;;  %s1630_s30 = smov [#allocation5]  }
  0x16   : > { %p1749_p10 = pnand %p1017_p7, %p294_p8  ;;  %s328_s12 = sshll.u32 %s1630_s30, 4  ;;  %s1755_s12 = int_to_ptr.vmem [resolvable:$true] %s328_s12 }
  0x17   : > { %s1631_s14 = smov [#allocation2]   ;;  %s1632_s16 = smov [#allocation7]  }
  0x18   : > { %s2029_s29 = scalar_select %p1749_p10, 1, 0 }
  0x19   : > { %p1375_p11 = pneg %p1749_p10  ;;  %s312_s15 = sshll.u32 %s1631_s14, 4  ;;  %s1763_s15 = int_to_ptr.vmem [resolvable:$true] %s312_s15 }
  0x1a   : > { %s1765_s22 = sshll.u32 %s1632_s16, 4  ;;  %s1442_s26 = scalar_lea.hbm %s2003_s5, 2048  ;;  %s345_s22 = int_to_ptr.vmem [resolvable:$true] %s1765_s22 }
  0x1b   : > { %p1759_p12 = pnand %p2013_p9, %p1375_p11  ;;  %p1443_p13 = scmp.ne.s32.totalorder %s2003_s5, %s1442_s26 }
  0x1c   : > { %p1449_p3 = scmp.lt.u32.totalorder %s1442_s26, %s2003_s5 }
  0x1d   : > { %p1775_p0 = pneg %p1759_p12 }
  0x1f   : > { %p1445_p1 = pnand %p1775_p0, %p1443_p13 }
  0x21   : > { %p1446_p2 = pneg %p1445_p1 }
  0x23   : > { %p1451_p4 = pnand %p1449_p3, %p1446_p2 }
  0x25   : > { %1454 = shalt.err (!%p1451_p4)
}
  0x26   : > { %s1455_s19 = scalar_lea.vmem %s1755_s12, 2048  ;;  %p1463_p9 = scmp.lt.s32.totalorder %s1755_s12, %s1755_s12 }
  0x27   : > { %p1456_p7 = scmp.ne.s32.totalorder %s1755_s12, %s1455_s19  ;;  %p1464_p6 = scmp.lt.s32.totalorder %s1455_s19, %s1455_s19 }
  0x29   : > { %p1458_p8 = pnand %p1456_p7, %p1775_p0  ;;  %p1465_p13 = por %p1464_p6, %p1463_p9 }
  0x2b   : > { %p1459_p11 = pneg %p1458_p8 }
  0x2d   : > { %p1466_p1 = pnand %p1465_p13, %p1459_p11 }
  0x2f   : > { %1469 = shalt.err (!%p1466_p1)
}
  0x30   : > { %s1633_s24 = smov 128   ;;  %s1634_s26 = smov 8  }
  0x31   : > { %1381 = dma.hbm_to_vmem [thread:$0]  (!%p1759_p12), %s2003_s5, 2048, %s1755_s12, [#allocation6], %s1633_s24, %s1633_s24, %s1634_s26  }
  0x32   : > { %s1470_s19 = scalar_lea.hbm %s2001_s3, 2048 }
  0x33   : > { %p1471_p6 = scmp.ne.s32.totalorder %s2001_s3, %s1470_s19  ;;  %p1477_p3 = scmp.lt.u32.totalorder %s1470_s19, %s2001_s3 }
  0x35   : > { %p1473_p9 = pnand %p1471_p6, %p1775_p0 }
  0x37   : > { %p1474_p2 = pneg %p1473_p9 }
  0x39   : > { %p1479_p4 = pnand %p1477_p3, %p1474_p2 }
  0x3b   : > { %1482 = shalt.err (!%p1479_p4)
}
  0x3c   : > { %s1483_s12 = scalar_lea.vmem %s1763_s15, 2048  ;;  %p1491_p13 = scmp.lt.s32.totalorder %s1763_s15, %s1763_s15 }
  0x3d   : > { %p1484_p7 = scmp.ne.s32.totalorder %s1763_s15, %s1483_s12  ;;  %p1492_p1 = scmp.lt.s32.totalorder %s1483_s12, %s1483_s12 }
  0x3f   : > { %p1486_p8 = pnand %p1484_p7, %p1775_p0  ;;  %p1493_p6 = por %p1492_p1, %p1491_p13 }
  0x41   : > { %p1487_p11 = pneg %p1486_p8 }
  0x43   : > { %p1494_p9 = pnand %p1493_p6, %p1487_p11 }
  0x45   : > { %1497 = shalt.err (!%p1494_p9)
}
  0x46   : > { %1378 = dma.hbm_to_vmem [thread:$0]  (!%p1759_p12), %s2001_s3, 2048, %s1763_s15, [#allocation3], %s1633_s24, %s1633_s24, %s1634_s26  }
  0x47   : > { %s1498_s25 = scalar_lea.hbm %s2005_s7, 2048 }
  0x48   : > { %p1499_p2 = scmp.ne.s32.totalorder %s2005_s7, %s1498_s25  ;;  %p1505_p7 = scmp.lt.u32.totalorder %s1498_s25, %s2005_s7 }
  0x4a   : > { %p1501_p3 = pnand %p1499_p2, %p1775_p0 }
  0x4c   : > { %p1502_p4 = pneg %p1501_p3 }
  0x4e   : > { %p1507_p8 = pnand %p1505_p7, %p1502_p4 }
  0x50   : > { %1510 = shalt.err (!%p1507_p8)
}
  0x51   : > { %s1511_s12 = scalar_lea.vmem %s345_s22, 2048  ;;  %p1519_p6 = scmp.lt.s32.totalorder %s345_s22, %s345_s22 }
  0x52   : > { %p1512_p11 = scmp.ne.s32.totalorder %s345_s22, %s1511_s12  ;;  %p1520_p9 = scmp.lt.s32.totalorder %s1511_s12, %s1511_s12 }
  0x54   : > { %p1514_p13 = pnand %p1512_p11, %p1775_p0  ;;  %p1521_p5 = por %p1520_p9, %p1519_p6 }
  0x56   : > { %p1515_p1 = pneg %p1514_p13 }
  0x58   : > { %p1522_p10 = pnand %p1521_p5, %p1515_p1 }
  0x5a   : > { %1525 = shalt.err (!%p1522_p10)
}
  0x5b   : > { %1384 = dma.hbm_to_vmem [thread:$0]  (!%p1759_p12), %s2005_s7, 2048, %s345_s22, [#allocation6], %s1633_s24, %s1633_s24, %s1634_s26  }
  0x5c   : > { %s1635_s17 = smov [#allocation8]   ;;  %s1526_s30 = scalar_lea.hbm %s2007_s9, 2048 }
  0x5d   : > { %s360_s20 = sshll.u32 %s1635_s17, 4  ;;  %p1527_p5 = scmp.ne.s32.totalorder %s2007_s9, %s1526_s30  ;;  %s361_s20 = int_to_ptr.vmem [resolvable:$true] %s360_s20 }
  0x5e   : > { %p1533_p3 = scmp.lt.u32.totalorder %s1526_s30, %s2007_s9 }
  0x5f   : > { %p1529_p10 = pnand %p1527_p5, %p1775_p0 }
  0x61   : > { %p1530_p2 = pneg %p1529_p10 }
  0x63   : > { %p1535_p4 = pnand %p1533_p3, %p1530_p2 }
  0x65   : > { %1538 = shalt.err (!%p1535_p4)
}
  0x66   : > { %s1539_s22 = scalar_lea.vmem %s361_s20, 2048  ;;  %p1547_p13 = scmp.lt.s32.totalorder %s361_s20, %s361_s20 }
  0x67   : > { %p1540_p7 = scmp.ne.s32.totalorder %s361_s20, %s1539_s22  ;;  %p1548_p1 = scmp.lt.s32.totalorder %s1539_s22, %s1539_s22 }
  0x69   : > { %p1542_p8 = pnand %p1540_p7, %p1775_p0  ;;  %p1549_p6 = por %p1548_p1, %p1547_p13 }
  0x6b   : > { %p1543_p11 = pneg %p1542_p8 }
  0x6d   : > { %p1550_p9 = pnand %p1549_p6, %p1543_p11 }
  0x6f   : > { %1553 = shalt.err (!%p1550_p9)
}
  0x70   : > { %1387 = dma.hbm_to_vmem [thread:$0]  (!%p1759_p12), %s2007_s9, 2048, %s361_s20, [#allocation9], %s1633_s24, %s1633_s24, %s1634_s26  }
  0x71   : > { %p2032_p5 = scmp.ne.s32.totalorder %s2029_s29, 0 }
  0x72   : > { %p2033_p0 = scmp.eq.s32.totalorder (!%p2032_p5), %s1721_s21, 0 }
  0x73   : > { %386 = sbr.rel (%p2032_p5) target bundleno = 1228 (0x4cc), region = 64 }
  0x7a   : > { %1599 = dma.done.wait (%p2033_p0), [#allocation3], 2048   ;;  %p2034_p10 = pmov %p2033_p0 }
  0x7b   : > { %p2035_p2 = pmov %p2033_p0 }
  0x7c   : > { %1601 = vsyncadd (%p2034_p10), [#allocation3], 4294965248 }
  0x7d   : > { %1603 = dma.done.wait (%p2035_p2), [#allocation6], 4096   ;;  %p2036_p3 = pmov %p2033_p0 }
  0x7e   : > { %p2037_p4 = pmov %p2033_p0 }
  0x7f   : > { %1605 = vsyncadd (%p2036_p3), [#allocation6], 4294963200 }
  0x80   : > { %1607 = dma.done.wait (%p2037_p4), [#allocation9], 2048   ;;  %p2038_p12 = pmov %p2033_p0 }
  0x81   : > { %p437_p7 = scmp.lt.s32.totalorder %s1721_s21, 3  ;;  %v1636_v0 = vmov 0.0|0.0   ;;  %vm1637_vm0 = vmmov 0   ;;  %v1638_v1 = vmov 0.0   ;;  %v442_v2 = vld [vmem:[%s1999_s1] sm:$0xff]  ;;  %v443_v3 = vld [vmem:[%s1999_s1 + $0x8] sm:$0xff] }
  0x82   : > { %1609 = vsyncadd (%p2038_p12), [#allocation9], 4294965248  ;;  %1258 = vmatprep.subr.bf16.mxu0 %v1636_v0  ;;  %1115 = vmatprep.mubr.msk.f32.mxu0 %vm1637_vm0, %v1638_v1  ;;  %v1259_v4 = vpack.c.bf16 %v443_v3, %v442_v2  ;;  %v526_v5 = vld [vmem:[#allocation2] sm:$0xff]  ;;  %v527_v6 = vld [vmem:[#allocation2 + $0x8] sm:$0xff]  ;;  %vm451_vm1 = vcmask 130048   ;;  %s1037_s26 = sshll.u32 %s1721_s21, 7 }
  0x83   : > { %s438_s23 = scalar_select %p437_p7, %s1721_s21, 3  ;;  %1261 = vmatprep.subr.bf16.mxu1 %v1636_v0  ;;  %1150 = vmatprep.mubr.msk.f32.mxu1 %vm1637_vm0, %v1638_v1  ;;  %v528_v7 = vld [vmem:[#allocation2 + $0x10] sm:$0xff]  ;;  %v1262_v8 = vpack.c.bf16 %v527_v6, %v526_v5  ;;  %v529_v9 = vld [vmem:[#allocation2 + $0x18] sm:$0xff]  ;;  %v530_v12 = vld [vmem:[#allocation2 + $0x20] sm:$0xff] }
  0x84   : > { %1260 = vmatpush3.bf16.msra.mxu0 %v1259_v4  ;;  %v1265_v11 = vpack.c.bf16 %v529_v9, %v528_v7  ;;  %v531_v13 = vld [vmem:[#allocation2 + $0x28] sm:$0xff]  ;;  %v532_v15 = vld [vmem:[#allocation2 + $0x30] sm:$0xff]  ;;  %v533_v16 = vld [vmem:[#allocation2 + $0x38] sm:$0xff]  ;;  %s2039_s30 = sld [smem:[#allocation21_spill]]  ;;  %p2040_p11 = scmp.ne.s32.totalorder %s2026_s27, 0 }
  0x85   : > { %s1029_s29 = sshll.u32 %s438_s23, 3  ;;  %1263 = vmatpush3.bf16.msra.mxu1 %v1262_v8  ;;  %1285 = vmatprep.subr.bf16.mxu0 %v1636_v0  ;;  %v1268_v14 = vpack.c.bf16 %v531_v13, %v530_v12  ;;  %v1271_v17 = vpack.c.bf16 %v533_v16, %v532_v15  ;;  %v534_v18 = vld [vmem:[#allocation2 + $0x40] sm:$0xff]  ;;  %v535_v19 = vld [vmem:[#allocation2 + $0x48] sm:$0xff]  ;;  %v536_v21 = vld [vmem:[#allocation2 + $0x50] sm:$0xff]  ;;  %s434_s23 = sand.u32 1, %s1620_s18  }
  0x86   : > { %s440_s25 = scalar_lea.vmem %s1998_s0, %s1029_s29  ;;  %1264 = vmatprep.subr.bf16.mxu1 %v1636_v0  ;;  %v1274_v20 = vpack.c.bf16 %v535_v19, %v534_v18  ;;  %v537_v22 = vld [vmem:[#allocation2 + $0x58] sm:$0xff]  ;;  %v538_v24 = vld [vmem:[#allocation2 + $0x60] sm:$0xff]  ;;  %v539_v25 = vld [vmem:[#allocation2 + $0x68] sm:$0xff]  ;;  %s1028_s29 = sshll.u32 %s434_s23, 3 }
  0x87   : > { %v441_v10 = vld [vmem:[%s440_s25] sm:$0xff]  ;;  %v1277_v23 = vpack.c.bf16 %v537_v22, %v536_v21  ;;  %v1280_v26 = vpack.c.bf16 %v539_v25, %v538_v24  ;;  %v540_v27 = vld [vmem:[#allocation2 + $0x70] sm:$0xff]  ;;  %v541_v28 = vld [vmem:[#allocation2 + $0x78] sm:$0xff]  ;;  %s436_s17 = scalar_lea.vmem [#allocation10], %s1028_s29  ;;  %s903_s16 = scalar_lea.sflag [#allocation4], %s434_s23 }
  0x88   : > { %1116 = vmatmul.mubr.msk.f32.vlgmr.msra.gmra.mrb[0].mxu0 %vm451_vm1, %v441_v10  ;;  %v1283_v29 = vpack.c.bf16 %v541_v28, %v540_v27  ;;  %v620_v30 = vld [vmem:[#allocation5] sm:$0xff]  ;;  %v621_v31 = vld [vmem:[#allocation5 + $0x8] sm:$0xff]  ;;  %v622_v32 = vld [vmem:[#allocation5 + $0x10] sm:$0xff]  ;;  %s916_s20 = sshll.u32 %s436_s17, 4  ;;  %s1639_s21 = smov [#allocation10]   ;;  %s1958_s20 = int_to_ptr.vmem [resolvable:$true] %s916_s20 }
  0x89   : > { %1185 = vmatprep.mubr.msk.f32.mxu0 %vm1637_vm0, %v1638_v1  ;;  %1266 = vmatpush3.bf16.msra.mxu1 %v1265_v11  ;;  %v1286_v33 = vpack.c.bf16 %v621_v31, %v620_v30  ;;  %v623_v34 = vld [vmem:[#allocation5 + $0x18] sm:$0xff]  ;;  %v624_v36 = vld [vmem:[#allocation5 + $0x20] sm:$0xff]  ;;  %v625_v37 = vld [vmem:[#allocation5 + $0x28] sm:$0xff]  ;;  %s1554_s19 = scalar_lea.vmem %s1958_s20, 128  ;;  %s1558_s12 = sshll.u32 %s1639_s21, 4  ;;  %s1559_s12 = int_to_ptr.vmem [resolvable:$false] %s1558_s12 }
  0x8a   : > { %1267 = vmatprep.subr.bf16.mxu1 %v1636_v0  ;;  %v1289_v35 = vpack.c.bf16 %v623_v34, %v622_v32  ;;  %v1292_v38 = vpack.c.bf16 %v625_v37, %v624_v36  ;;  %v626_v39 = vld [vmem:[#allocation5 + $0x30] sm:$0xff]  ;;  %v627_v40 = vld [vmem:[#allocation5 + $0x38] sm:$0xff]  ;;  %v628_v42 = vld [vmem:[#allocation5 + $0x40] sm:$0xff]  ;;  %s1956_s14 = scalar_lea.hbm %s2039_s30, %s1037_s26  ;;  %p1555_p8 = scmp.ne.s32.totalorder %s1958_s20, %s1554_s19 }
  0x8b   : > { %1287 = vmatpush3.bf16.msra.mxu0 %v1286_v33  ;;  %v1295_v41 = vpack.c.bf16 %v627_v40, %v626_v39  ;;  %v629_v43 = vld [vmem:[#allocation5 + $0x48] sm:$0xff]  ;;  %v630_v45 = vld [vmem:[#allocation5 + $0x50] sm:$0xff]  ;;  %v631_v46 = vld [vmem:[#allocation5 + $0x58] sm:$0xff]  ;;  %s1560_s22 = scalar_lea.vmem %s1559_s12, 256  ;;  %p1561_p6 = scmp.lt.s32.totalorder %s1958_s20, %s1559_s12 }
  0x8c   : > { %1288 = vmatprep.subr.bf16.mxu0 %v1636_v0  ;;  %v1298_v44 = vpack.c.bf16 %v629_v43, %v628_v42  ;;  %v1301_v47 = vpack.c.bf16 %v631_v46, %v630_v45  ;;  %v632_v48 = vld [vmem:[#allocation5 + $0x60] sm:$0xff]  ;;  %v633_v49 = vld [vmem:[#allocation5 + $0x68] sm:$0xff]  ;;  %v634_v56 = vld [vmem:[#allocation5 + $0x70] sm:$0xff]  ;;  %p1556_p13 = pnand %p1555_p8, %p2040_p11  ;;  %p1562_p9 = scmp.lt.s32.totalorder %s1560_s22, %s1554_s19 }
  0x8d   : > { %1269 = vmatpush3.bf16.msra.mxu1 %v1268_v14  ;;  %v1304_v50 = vpack.c.bf16 %v633_v49, %v632_v48  ;;  %v1030_v51 = vld [vmem:[%s2000_s2] ss:$0 sm:$0xff]  ;;  %v635_v57 = vld [vmem:[#allocation5 + $0x78] sm:$0xff]  ;;  %v715_v60 = vld [vmem:[#allocation7 + $0x8] sm:$0xff] }
  0x8e   : > { %1270 = vmatprep.subr.bf16.mxu1 %v1636_v0  ;;  %v1307_v58 = vpack.c.bf16 %v635_v57, %v634_v56  ;;  %v714_v59 = vld [vmem:[#allocation7] sm:$0xff]  ;;  %v716_v61 = vld [vmem:[#allocation7 + $0x10] sm:$0xff]  ;;  %v717_v63 = vld [vmem:[#allocation7 + $0x18] sm:$0xff]  ;;  %p1557_p1 = pneg %p1556_p13  ;;  %p1563_p5 = por %p1562_p9, %p1561_p6 }
  0x8f   : > { %1290 = vmatpush3.bf16.msra.mxu0 %v1289_v35  ;;  %v1310_v62 = vpack.c.bf16 %v715_v60, %v714_v59  ;;  %v1313_v2 = vpack.c.bf16 %v717_v63, %v716_v61  ;;  %v718_v3 = vld [vmem:[#allocation7 + $0x20] sm:$0xff]  ;;  %v719_v4 = vld [vmem:[#allocation7 + $0x28] sm:$0xff]  ;;  %v720_v6 = vld [vmem:[#allocation7 + $0x30] sm:$0xff] }
  0x90   : > { %1291 = vmatprep.subr.bf16.mxu0 %v1636_v0  ;;  %v1316_v5 = vpack.c.bf16 %v719_v4, %v718_v3  ;;  %v721_v7 = vld [vmem:[#allocation7 + $0x38] sm:$0xff]  ;;  %v722_v9 = vld [vmem:[#allocation7 + $0x40] sm:$0xff]  ;;  %v723_v10 = vld [vmem:[#allocation7 + $0x48] sm:$0xff]  ;;  %p1564_p0 = pnand %p1563_p5, %p1557_p1 }
  0x91   : > { %1272 = vmatpush3.bf16.msra.mxu1 %v1271_v17  ;;  %v1319_v8 = vpack.c.bf16 %v721_v7, %v720_v6  ;;  %v1322_v11 = vpack.c.bf16 %v723_v10, %v722_v9  ;;  %v724_v12 = vld [vmem:[#allocation7 + $0x50] sm:$0xff]  ;;  %v725_v13 = vld [vmem:[#allocation7 + $0x58] sm:$0xff]  ;;  %v726_v15 = vld [vmem:[#allocation7 + $0x60] sm:$0xff] }
  0x92   : > { %1273 = vmatprep.subr.bf16.mxu1 %v1636_v0  ;;  %v1325_v14 = vpack.c.bf16 %v725_v13, %v724_v12  ;;  %v727_v16 = vld [vmem:[#allocation7 + $0x68] sm:$0xff]  ;;  %v1032_v18 = vld [vmem:[%s2002_s4] ss:$0 sm:$0xff]  ;;  %v729_v24 = vld [vmem:[#allocation7 + $0x78] sm:$0xff] }
  0x93   : > { %1293 = vmatpush3.bf16.msra.mxu0 %v1292_v38  ;;  %v1328_v17 = vpack.c.bf16 %v727_v16, %v726_v15  ;;  %v809_v27 = vld [vmem:[#allocation8 + $0x8] sm:$0xff]  ;;  %v810_v28 = vld [vmem:[#allocation8 + $0x10] sm:$0xff]  ;;  %v811_v30 = vld [vmem:[#allocation8 + $0x18] sm:$0xff] }
  0x94   : > { %1294 = vmatprep.subr.bf16.mxu0 %v1636_v0  ;;  %v1337_v31 = vpack.c.bf16 %v811_v30, %v810_v28  ;;  %v812_v32 = vld [vmem:[#allocation8 + $0x20] sm:$0xff]  ;;  %v813_v33 = vld [vmem:[#allocation8 + $0x28] sm:$0xff]  ;;  %v815_v35 = vld [vmem:[#allocation8 + $0x38] sm:$0xff] }
  0x95   : > { %1275 = vmatpush3.bf16.msra.mxu1 %v1274_v20  ;;  %v1340_v34 = vpack.c.bf16 %v813_v33, %v812_v32  ;;  %v816_v37 = vld [vmem:[#allocation8 + $0x40] sm:$0xff]  ;;  %v817_v38 = vld [vmem:[#allocation8 + $0x48] sm:$0xff]  ;;  %v818_v40 = vld [vmem:[#allocation8 + $0x50] sm:$0xff] }
  0x96   : > { %1276 = vmatprep.subr.bf16.mxu1 %v1636_v0  ;;  %v1346_v39 = vpack.c.bf16 %v817_v38, %v816_v37  ;;  %v820_v43 = vld [vmem:[#allocation8 + $0x60] sm:$0xff] }
  0x97   : > { %1296 = vmatpush3.bf16.msra.mxu0 %v1295_v41  ;;  %v819_v41 = vld [vmem:[#allocation8 + $0x58] sm:$0xff]  ;;  %v1033_v46 = vld [vmem:[%s2004_s6] ss:$0 sm:$0xff] }
  0x98   : > { %1297 = vmatprep.subr.bf16.mxu0 %v1636_v0  ;;  %v1349_v42 = vpack.c.bf16 %v819_v41, %v818_v40 }
  0x99   : > { %1278 = vmatpush3.bf16.msra.mxu1 %v1277_v23  ;;  %v728_v23 = vld [vmem:[#allocation7 + $0x70] sm:$0xff] }
  0x9a   : > { %1279 = vmatprep.subr.bf16.mxu1 %v1636_v0  ;;  %v1331_v25 = vpack.c.bf16 %v729_v24, %v728_v23 }
  0x9b   : > { %1299 = vmatpush3.bf16.msra.mxu0 %v1298_v44  ;;  %v821_v44 = vld [vmem:[#allocation8 + $0x68] sm:$0xff] }
  0x9c   : > { %1300 = vmatprep.subr.bf16.mxu0 %v1636_v0  ;;  %v1352_v45 = vpack.c.bf16 %v821_v44, %v820_v43 }
  0x9d   : > { %1281 = vmatpush3.bf16.msra.mxu1 %v1280_v26  ;;  %v808_v26 = vld [vmem:[#allocation8] sm:$0xff] }
  0x9e   : > { %1282 = vmatprep.subr.bf16.mxu1 %v1636_v0 }
  0x9f   : > { %1302 = vmatpush3.bf16.msra.mxu0 %v1301_v47 }
  0xa0   : > { %1303 = vmatprep.subr.bf16.mxu0 %v1636_v0 }
  0xa1   : > { %1284 = vmatpush3.bf16.msra.mxu1 %v1283_v29  ;;  %v1334_v29 = vpack.c.bf16 %v809_v27, %v808_v26 }
  0xa2   : > { %1309 = vmatprep.subr.bf16.mxu1 %v1636_v0 }
  0xa3   : > { %1305 = vmatpush3.bf16.msra.mxu0 %v1304_v50 }
  0xa4   : > { %1306 = vmatprep.subr.bf16.mxu0 %v1636_v0 }
  0xa7   : > { %1308 = vmatpush3.bf16.msra.mxu0 %v1307_v58  ;;  %v1035_v58 = vld [vmem:[%s2008_s10] ss:$0 sm:$0xff] }
  0xa8   : > { %1333 = vmatprep.subr.bf16.mxu0 %v1636_v0 }
 0x15b   : > { %v521_v52 = vpop.f32.mrb[0].mxu0 }
 0x15c   : > { %v522_v53 = vadd.f32 %v1030_v51, %v521_v52  ;;  %v1117_v54 = vpop.f32.mrb[1].mxu0  ;;  %v822_v51 = vld [vmem:[#allocation8 + $0x70] sm:$0xff]  ;;  %v823_v52 = vld [vmem:[#allocation8 + $0x78] sm:$0xff] }
 0x15d   : > { %v1034_v54 = vld [vmem:[%s2006_s8] ss:$0 sm:$0xff] }
 0x15e   : > { %v525_v55 = vmax.f32 %v522_v53, 0.0  ;;  %v1355_v53 = vpack.c.bf16 %v823_v52, %v822_v51 }
 0x160   : > { %1151 = vmatmul.mubr.f32.vlgmr.msra.gmra.mrb[0].mxu1 %v525_v55 }
 0x161   : > { %1220 = vmatprep.mubr.msk.f32.mxu1 %vm1637_vm0, %v1638_v1  ;;  %1311 = vmatpush3.bf16.msra.mxu1 %v1310_v62 }
 0x162   : > { %1312 = vmatprep.subr.bf16.mxu1 %v1636_v0 }
 0x165   : > { %1314 = vmatpush3.bf16.msra.mxu1 %v1313_v2 }
 0x166   : > { %1315 = vmatprep.subr.bf16.mxu1 %v1636_v0 }
 0x169   : > { %1317 = vmatpush3.bf16.msra.mxu1 %v1316_v5 }
 0x16a   : > { %1318 = vmatprep.subr.bf16.mxu1 %v1636_v0 }
 0x16d   : > { %1320 = vmatpush3.bf16.msra.mxu1 %v1319_v8 }
 0x16e   : > { %1321 = vmatprep.subr.bf16.mxu1 %v1636_v0 }
 0x171   : > { %1323 = vmatpush3.bf16.msra.mxu1 %v1322_v11 }
 0x172   : > { %1324 = vmatprep.subr.bf16.mxu1 %v1636_v0 }
 0x175   : > { %1326 = vmatpush3.bf16.msra.mxu1 %v1325_v14 }
 0x176   : > { %1327 = vmatprep.subr.bf16.mxu1 %v1636_v0 }
 0x179   : > { %1329 = vmatpush3.bf16.msra.mxu1 %v1328_v17 }
 0x17a   : > { %1330 = vmatprep.subr.bf16.mxu1 %v1636_v0 }
 0x17d   : > { %1332 = vmatpush3.bf16.msra.mxu1 %v1331_v25 }
 0x233   : > { %v615_v19 = vpop.f32.mrb[0].mxu1 }
 0x234   : > { %v616_v20 = vadd.f32 %v1032_v18, %v615_v19  ;;  %v1152_v21 = vpop.f32.mrb[1].mxu1 }
 0x236   : > { %v619_v22 = vmax.f32 %v616_v20, 0.0 }
 0x238   : > { %1186 = vmatmul.mubr.f32.vlgmr.msra.gmra.mrb[2].mxu0 %v619_v22 }
 0x239   : > { %1255 = vmatprep.mubr.msk.f32.mxu0 %vm1637_vm0, %v1638_v1  ;;  %1335 = vmatpush3.bf16.msra.mxu0 %v1334_v29  ;;  %v814_v1 = vld [vmem:[#allocation8 + $0x30] sm:$0xff] }
 0x23a   : > { %1336 = vmatprep.subr.bf16.mxu0 %v1636_v0  ;;  %v1343_v36 = vpack.c.bf16 %v815_v35, %v814_v1 }
 0x23d   : > { %1338 = vmatpush3.bf16.msra.mxu0 %v1337_v31 }
 0x23e   : > { %1339 = vmatprep.subr.bf16.mxu0 %v1636_v0 }
 0x241   : > { %1341 = vmatpush3.bf16.msra.mxu0 %v1340_v34 }
 0x242   : > { %1342 = vmatprep.subr.bf16.mxu0 %v1636_v0 }
 0x245   : > { %1344 = vmatpush3.bf16.msra.mxu0 %v1343_v36 }
 0x246   : > { %1345 = vmatprep.subr.bf16.mxu0 %v1636_v0 }
 0x249   : > { %1347 = vmatpush3.bf16.msra.mxu0 %v1346_v39 }
 0x24a   : > { %1348 = vmatprep.subr.bf16.mxu0 %v1636_v0 }
 0x24d   : > { %1350 = vmatpush3.bf16.msra.mxu0 %v1349_v42 }
 0x24e   : > { %1351 = vmatprep.subr.bf16.mxu0 %v1636_v0 }
 0x251   : > { %1353 = vmatpush3.bf16.msra.mxu0 %v1352_v45 }
 0x252   : > { %1354 = vmatprep.subr.bf16.mxu0 %v1636_v0 }
 0x255   : > { %1356 = vmatpush3.bf16.msra.mxu0 %v1355_v53 }
 0x30b   : > { %v709_v47 = vpop.f32.mrb[2].mxu0 }
 0x30c   : > { %v710_v48 = vadd.f32 %v1033_v46, %v709_v47  ;;  %v1187_v49 = vpop.f32.mrb[3].mxu0 }
 0x30e   : > { %v713_v50 = vmax.f32 %v710_v48, 0.0 }
 0x310   : > { %1221 = vmatmul.mubr.f32.vlgmr.msra.gmra.mrb[2].mxu1 %v713_v50 }
 0x3e3   : > { %v803_v0 = vpop.f32.mrb[2].mxu1 }
 0x3e4   : > { %v804_v55 = vadd.f32 %v1034_v54, %v803_v0  ;;  %v1222_v56 = vpop.f32.mrb[3].mxu1 }
 0x3e6   : > { %v807_v57 = vmax.f32 %v804_v55, 0.0 }
 0x3e8   : > { %1256 = vmatmul.mubr.f32.vlgmr.msra.gmra.mrb[4].mxu0 %v807_v57 }
 0x4bb   : > { %v897_v59 = vpop.f32.mrb[4].mxu0 }
 0x4bc   : > { %v898_v60 = vadd.f32 %v1035_v58, %v897_v59  ;;  %v1257_v61 = vpop.f32.mrb[5].mxu0 }
 0x4be   : > { %901 = vst [vmem:[%s436_s17] sm:$0xff] %v898_v60 }
 0x4bf   : > { %1567 = shalt.err (!%p1564_p0)
}
 0x4c0   : > { %s1568_s15 = scalar_lea.hbm %s1956_s14, 128  ;;  %s1572_s29 = scalar_lea.hbm %s2039_s30, 512 }
 0x4c1   : > { %p1569_p10 = scmp.ne.s32.totalorder %s1956_s14, %s1568_s15  ;;  %p1573_p4 = scmp.lt.u32.totalorder %s1956_s14, %s2039_s30 }
 0x4c2   : > { %p1574_p12 = scmp.lt.u32.totalorder %s1572_s29, %s1568_s15  ;;  %p1576_p8 = scmp.lt.u32.totalorder %s1568_s15, %s1956_s14 }
 0x4c3   : > { %p1570_p2 = pnand %p1569_p10, %p2040_p11 }
 0x4c4   : > { %p1575_p7 = por %p1574_p12, %p1573_p4 }
 0x4c5   : > { %p1571_p3 = pneg %p1570_p2 }
 0x4c6   : > { %p1577_p13 = por %p1576_p8, %p1575_p7 }
 0x4c8   : > { %p1578_p1 = pnand %p1577_p13, %p1571_p3 }
 0x4ca   : > { %1581 = shalt.err (!%p1578_p1)
}
 0x4cb   : > { %1373 = dma.vmem_to_hbm [thread:$0]  (%p2040_p11), %s1958_s20, 128, %s1956_s14, %s903_s16  }
 0x4cc PF: > { %s2041_s26 = sld [smem:[#allocation17_spill]]  ;;  %s2042_s17 = sld [smem:[#allocation15_spill]] }
 0x4cd   : > { %s2043_s28 = sld [smem:[#allocation20_spill]] }
 0x4d2   : > { %p1400_p6 = scmp.ge.s32.totalorder %s2041_s26, 2  ;;  %s928_s25 = sand.u32 1, %s2042_s17  }
 0x4d3   : > { %p2044_p9 = scmp.ne.s32.totalorder %s2043_s28, 0  ;;  %s929_s19 = scalar_lea.sflag [#allocation4], %s928_s25 }
 0x4d5   : > { %p1389_p5 = pnand %p1400_p6, %p2044_p9 }
 0x4d7   : > { %1611 = dma.done.wait (!%p1389_p5), %s929_s19, 128  }
 0x4d8   : > { %1613 = vsyncadd (!%p1389_p5), %s929_s19, 4294967168  ;;  %s2045_s20 = sld [smem:[#allocation18_spill]]  ;;  %s2046_s21 = sld [smem:[#allocation16_spill]] }
 0x4d9   : > { %s2047_s19 = sld [smem:[#allocation19_spill]]  ;;  %s2048_s17 = smov %s1620_s18 }
 0x4de   : > { %p24_p0 = scmp.ge.s32.totalorder %s2045_s20, 6   ;;  %s2049_s18 = smov %s2046_s21 }
 0x4e0   :  { %26 = sbr.rel (!%p24_p0) target bundleno = 8 (0x8), region = 116 }
 0x4e7   :  { %934 = vsyncpa [#allocation3], 1 }
 0x4e8   :  { %936 = vsyncpa [#allocation3 + $0x1], 1 }
 0x4e9   :  { %937 = vsyncpa [#allocation6], 1 }
 0x4ea   :  { %938 = vsyncpa [#allocation9], 1 }
 0x4eb   :  { %939 = vsyncpa [#allocation4], 1 }
 0x4ec   :  { %941 = vsyncpa [#allocation4 + $0x1], 1 }

</bundles_post_ra>
